<compile_context>
chip_gen: v5e
topology: v5e:2x2
jax: 0.10.0
libtpu: 0.0.40
codegen_flags: <defaults>
</compile_context>

<pallas_src>
import functools
import math

import jax
import jax.numpy as jnp
from jax.experimental import pallas as pl
from jax.experimental.pallas import tpu as pltpu


def transformer_layer_kernel(*refs, heads, d_k, tq, mask_mode, eps=1e-5):
    if mask_mode == "dense":
        x_ref, mask_ref, *rest = refs
    else:
        x_ref, *rest = refs
        mask_ref = None
    (ln1_w_ref, ln1_b_ref,
     wq_ref, bq_ref, wk_ref, bk_ref, wv_ref, bv_ref,
     wo_ref, bo_ref,
     ln2_w_ref, ln2_b_ref,
     w1_ref, b1_ref, w2_ref, b2_ref,
     out_ref) = rest

    f32 = jnp.float32
    bf16 = jnp.bfloat16
    S = x_ref.shape[1]                       # full (key) sequence length
    q_start = pl.multiple_of(pl.program_id(1) * tq, tq)

    def layer_norm(v, w_ref, b_ref):
        mu = jnp.mean(v, axis=-1, keepdims=True)
        var = jnp.mean(jnp.square(v - mu), axis=-1, keepdims=True)
        return (v - mu) * jax.lax.rsqrt(var + eps) * w_ref[0] + b_ref[0]

    # ---------------- self-attention block (pre-LN) ----------------
    x_full = x_ref[0].astype(f32)                             # [S, D]   (for K / V)
    x_q = x_ref[0, pl.ds(q_start, tq), :].astype(f32)         # [TQ, D]  (queries + residual)

    z_full = layer_norm(x_full, ln1_w_ref, ln1_b_ref)         # f32
    z_q = layer_norm(x_q, ln1_w_ref, ln1_b_ref)               # f32 (tiny duplicate of TQ rows)
    z_full_bf = z_full.astype(bf16)

    scale = 1.0 / math.sqrt(d_k)
    # projections: bf16 operands, f32 accumulation, f32 bias add
    q = jnp.dot(z_q.astype(bf16), wq_ref[...], preferred_element_type=f32) + bq_ref[0]
    k = jnp.dot(z_full_bf, wk_ref[...], preferred_element_type=f32) + bk_ref[0]
    v = jnp.dot(z_full_bf, wv_ref[...], preferred_element_type=f32) + bv_ref[0]

    # fold softmax scale into the small q tensor (not the [H,TQ,S] scores)
    q_bf = (q * scale).astype(bf16).reshape(tq, heads, d_k)   # [TQ, H, dk]
    k_bf = k.astype(bf16).reshape(S, heads, d_k)              # [S,  H, dk]
    v_bf = v.astype(bf16).reshape(S, heads, d_k)              # [S,  H, dk]

    # batched-over-heads scores: [H, TQ, S], f32 accumulation on the MXU
    s = jnp.einsum('qhd,khd->hqk', q_bf, k_bf, preferred_element_type=f32)

    # additive mask bias, computed once (finite -1e30: no NaN for fully-masked rows)
    if mask_mode == "causal":
        q_pos = q_start + jax.lax.broadcasted_iota(jnp.int32, (tq, S), 0)
        k_pos = jax.lax.broadcasted_iota(jnp.int32, (tq, S), 1)
        neg_bias = jnp.where(k_pos > q_pos, f32(-1e30), f32(0.0))
        s = s + neg_bias[None, :, :]
    elif mask_mode == "dense":
        m = mask_ref[0].astype(f32)                           # [TQ, S]
        neg_bias = jnp.where(m == 0, f32(-1e30), f32(0.0))
        s = s + neg_bias[None, :, :]
    # mask_mode == "none": no bias

    # softmax over keys, in f32; denom reciprocal on the EUP
    s_max = jnp.max(s, axis=-1, keepdims=True)
    p = jnp.exp(s - s_max)
    denom = jnp.sum(p, axis=-1, keepdims=True)
    p_bf = (p * pl.reciprocal(denom, approx=True)).astype(bf16)   # [H, TQ, S]

    attn = jnp.einsum('hqk,khd->qhd', p_bf, v_bf, preferred_element_type=f32)
    attn = attn.reshape(tq, heads * d_k).astype(bf16)             # [TQ, D]
    attn_out = jnp.dot(attn, wo_ref[...], preferred_element_type=f32) + bo_ref[0]

    x1 = x_q + attn_out                                           # residual (dropout = identity)

    # ---------------- feed-forward block (pre-LN) ----------------
    z2 = layer_norm(x1, ln2_w_ref, ln2_b_ref).astype(bf16)
    h1 = jnp.maximum(jnp.dot(z2, w1_ref[...], preferred_element_type=f32) + b1_ref[0], 0.0)
    ff = jnp.dot(h1.astype(bf16), w2_ref[...], preferred_element_type=f32) + b2_ref[0]

    out_ref[0] = (x1 + ff).astype(out_ref.dtype)


def transformer_layer(x, params, *, heads, mask=None, causal=False, q_tile=None):
    """x: [S, B, D] (PyTorch layout).  mask: [Sq|1, Sk, B|1] (1.0 = attend) or None.
    causal=True generates the causal mask in-kernel (no HBM mask traffic).
    Returns [S, B, D] in x.dtype."""
    S, B, D = x.shape
    assert D % heads == 0
    d_k = D // heads

    if causal:
        mask_mode = "causal"
    elif mask is not None:
        mask_mode = "dense"
    else:
        mask_mode = "none"

    # Query tile: full sequence when small, else a <=512 multiple-of-8 divisor of S.
    # Bounds the [H, TQ, S] score tile in VMEM and adds parallel grid work (megacore).
    if q_tile is None:
        if S <= 512:
            tq = S
        else:
            tq = 8
            for cand in range(512, 7, -8):
                if S % cand == 0:
                    tq = cand
                    break
    else:
        tq = q_tile
    assert S % tq == 0 and (tq % 8 == 0 or tq == S)
    nq = S // tq

    x_bm = jnp.transpose(x, (1, 0, 2))                 # [B, S, D], keep input dtype

    def wt(w):   # PyTorch Linear weight [out, in] -> bf16 [in, out] for x @ W on the MXU
        return jnp.asarray(w).T.astype(jnp.bfloat16)

    def row(v):  # 1-D param -> f32 [1, dim]
        return jnp.asarray(v, jnp.float32).reshape(1, -1)

    param_arrays = [
        row(params["ln1_w"]), row(params["ln1_b"]),
        wt(params["wq"]), row(params["bq"]),
        wt(params["wk"]), row(params["bk"]),
        wt(params["wv"]), row(params["bv"]),
        wt(params["wo"]), row(params["bo"]),
        row(params["ln2_w"]), row(params["ln2_b"]),
        wt(params["w1"]), row(params["b1"]),
        wt(params["w2"]), row(params["b2"]),
    ]

    def const_spec(a):
        # Same block every grid step -> Pallas skips the re-DMA.
        # TODO(synk): on v7x, pipeline_mode=pl.Buffered(1) would drop the second weight
        # buffer (and d_ff should be k-tiled for very large models); kept default here.
        return pl.BlockSpec(a.shape, lambda b, qi: (0, 0))

    inputs = [x_bm]
    in_specs = [pl.BlockSpec((1, S, D), lambda b, qi: (b, 0, 0))]
    if mask_mode == "dense":
        mask_bm = jnp.transpose(
            jnp.broadcast_to(mask, (S, S, B)), (2, 0, 1)).astype(jnp.bfloat16)  # [B, Sq, Sk]
        inputs.append(mask_bm)
        in_specs.append(pl.BlockSpec((1, tq, S), lambda b, qi: (b, qi, 0)))
    inputs += param_arrays
    in_specs += [const_spec(a) for a in param_arrays]

    kernel = functools.partial(
        transformer_layer_kernel, heads=heads, d_k=d_k, tq=tq, mask_mode=mask_mode)

    out_bm = pl.pallas_call(
        kernel,
        out_shape=jax.ShapeDtypeStruct((B, S, D), x.dtype),
        grid=(B, nq),
        in_specs=in_specs,
        out_specs=pl.BlockSpec((1, tq, D), lambda b, qi: (b, qi, 0)),
        compiler_params=pltpu.CompilerParams(
            dimension_semantics=("parallel", "parallel"),
            vmem_limit_bytes=48 * 1024 * 1024),   # > 32 MiB scoped default, < v7x physical
    )(*inputs)

    return jnp.transpose(out_bm, (1, 0, 2))
    # TODO(synk): src_attn (decoder cross-attention branch) of TransformerLayer and the
    # gated FeedForward variant are not implemented; dropout is identity (eval mode).


# ----------------- pure-JAX f32 reference (for correctness check) -----------------
def reference(x, mask, params, *, heads, eps=1e-5):
    D = x.shape[-1]
    d_k = D // heads

    def ln(v, w, b):
        mu = jnp.mean(v, -1, keepdims=True)
        var = jnp.mean((v - mu) ** 2, -1, keepdims=True)
        return (v - mu) / jnp.sqrt(var + eps) * w + b

    def lin(v, w, b):
        return v @ w.T + b

    S, B, _ = x.shape
    z = ln(x, params["ln1_w"], params["ln1_b"])
    q = lin(z, params["wq"], params["bq"]).reshape(S, B, heads, d_k)
    k = lin(z, params["wk"], params["bk"]).reshape(S, B, heads, d_k)
    v = lin(z, params["wv"], params["bv"]).reshape(S, B, heads, d_k)
    scores = jnp.einsum("ibhd,jbhd->ijbh", q, k) / math.sqrt(d_k)
    m = mask[..., None]  # [Sq, Sk, B, 1]
    scores = jnp.where(m == 0, -jnp.inf, scores)
    attn = jax.nn.softmax(scores, axis=1)
    o = jnp.einsum("ijbh,jbhd->ibhd", attn, v).reshape(S, B, D)
    x = x + lin(o, params["wo"], params["bo"])
    z = ln(x, params["ln2_w"], params["ln2_b"])
    h = jnp.maximum(lin(z, params["w1"], params["b1"]), 0.0)
    x = x + lin(h, params["w2"], params["b2"])
    return x


if __name__ == "__main__":
    S, B, D, H, FF = 8, 2, 32, 4, 64

    key = jax.random.PRNGKey(0)
    keys = jax.random.split(key, 16)

    def lin_init(k, out_dim, in_dim):
        bound = 1.0 / math.sqrt(in_dim)
        kw, kb = jax.random.split(k)
        w = jax.random.uniform(kw, (out_dim, in_dim), jnp.float32, -bound, bound)
        b = jax.random.uniform(kb, (out_dim,), jnp.float32, -bound, bound)
        return w, b

    wq, bq = lin_init(keys[0], D, D)
    wk, bk = lin_init(keys[1], D, D)
    wv, bv = lin_init(keys[2], D, D)
    wo, bo = lin_init(keys[3], D, D)
    w1, b1 = lin_init(keys[4], FF, D)
    w2, b2 = lin_init(keys[5], D, FF)

    params = dict(
        ln1_w=jnp.ones((D,), jnp.float32), ln1_b=jnp.zeros((D,), jnp.float32),
        ln2_w=jnp.ones((D,), jnp.float32), ln2_b=jnp.zeros((D,), jnp.float32),
        wq=wq, bq=bq, wk=wk, bk=bk, wv=wv, bv=bv, wo=wo, bo=bo,
        w1=w1, b1=b1, w2=w2, b2=b2,
    )

    x = jax.random.normal(keys[6], (S, B, D), jnp.float32)
    # causal mask [seq_q, seq_k, batch]: query i may attend to keys j <= i
    causal = jnp.tril(jnp.ones((S, S), jnp.float32))
    mask = jnp.broadcast_to(causal[:, :, None], (S, S, B))

    ref = reference(x, mask, params, heads=H)

    # path 1: mask generated in-kernel (no HBM mask traffic)
    out_causal = jax.block_until_ready(transformer_layer(x, params, heads=H, causal=True))
    # path 2: dense (arbitrary) mask shipped as bf16 and tiled per query tile
    out_dense = jax.block_until_ready(transformer_layer(x, params, heads=H, mask=mask))

    assert out_causal.shape == (S, B, D) and out_dense.shape == (S, B, D)
    # bf16 matmul operands (f32 accumulation) -> loosened tolerance vs f32 reference
    tol = dict(atol=5e-2, rtol=5e-2)
    assert jnp.allclose(out_causal, ref, **tol), float(jnp.max(jnp.abs(out_causal - ref)))
    assert jnp.allclose(out_dense, ref, **tol), float(jnp.max(jnp.abs(out_dense - ref)))

    print("KERNEL_OK")
</pallas_src>

<mosaic_0001>
module attributes {stable_mosaic.version = 11 : i64} {
  func.func @transformer_layer_kernel(%arg0: i32, %arg1: i32, %arg2: memref<1x8x32xf32, #tpu.memory_space<vmem>>, %arg3: memref<1x32xf32, #tpu.memory_space<vmem>>, %arg4: memref<1x32xf32, #tpu.memory_space<vmem>>, %arg5: memref<32x32xbf16, #tpu.memory_space<vmem>>, %arg6: memref<1x32xf32, #tpu.memory_space<vmem>>, %arg7: memref<32x32xbf16, #tpu.memory_space<vmem>>, %arg8: memref<1x32xf32, #tpu.memory_space<vmem>>, %arg9: memref<32x32xbf16, #tpu.memory_space<vmem>>, %arg10: memref<1x32xf32, #tpu.memory_space<vmem>>, %arg11: memref<32x32xbf16, #tpu.memory_space<vmem>>, %arg12: memref<1x32xf32, #tpu.memory_space<vmem>>, %arg13: memref<1x32xf32, #tpu.memory_space<vmem>>, %arg14: memref<1x32xf32, #tpu.memory_space<vmem>>, %arg15: memref<32x64xbf16, #tpu.memory_space<vmem>>, %arg16: memref<1x64xf32, #tpu.memory_space<vmem>>, %arg17: memref<64x32xbf16, #tpu.memory_space<vmem>>, %arg18: memref<1x32xf32, #tpu.memory_space<vmem>>, %arg19: memref<1x8x32xf32, #tpu.memory_space<vmem>>) attributes {dimension_semantics = [#tpu.dimension_semantics<parallel>, #tpu.dimension_semantics<parallel>], iteration_bounds = array<i64: 2, 1>, scalar_prefetch = 0 : i64, scratch_operands = 0 : i64, tpu.core_type = #tpu.core_type<tc>, window_params = [{transform_indices = @transform_0, window_bounds = array<i64: 1, 8, 32>}, {pipeline_mode = #tpu.pipeline_mode<synchronous>, transform_indices = @transform_1, window_bounds = array<i64: 1, 32>}, {pipeline_mode = #tpu.pipeline_mode<synchronous>, transform_indices = @transform_2, window_bounds = array<i64: 1, 32>}, {pipeline_mode = #tpu.pipeline_mode<synchronous>, transform_indices = @transform_3, window_bounds = array<i64: 32, 32>}, {pipeline_mode = #tpu.pipeline_mode<synchronous>, transform_indices = @transform_4, window_bounds = array<i64: 1, 32>}, {pipeline_mode = #tpu.pipeline_mode<synchronous>, transform_indices = @transform_5, window_bounds = array<i64: 32, 32>}, {pipeline_mode = #tpu.pipeline_mode<synchronous>, transform_indices = @transform_6, window_bounds = array<i64: 1, 32>}, {pipeline_mode = #tpu.pipeline_mode<synchronous>, transform_indices = @transform_7, window_bounds = array<i64: 32, 32>}, {pipeline_mode = #tpu.pipeline_mode<synchronous>, transform_indices = @transform_8, window_bounds = array<i64: 1, 32>}, {pipeline_mode = #tpu.pipeline_mode<synchronous>, transform_indices = @transform_9, window_bounds = array<i64: 32, 32>}, {pipeline_mode = #tpu.pipeline_mode<synchronous>, transform_indices = @transform_10, window_bounds = array<i64: 1, 32>}, {pipeline_mode = #tpu.pipeline_mode<synchronous>, transform_indices = @transform_11, window_bounds = array<i64: 1, 32>}, {pipeline_mode = #tpu.pipeline_mode<synchronous>, transform_indices = @transform_12, window_bounds = array<i64: 1, 32>}, {pipeline_mode = #tpu.pipeline_mode<synchronous>, transform_indices = @transform_13, window_bounds = array<i64: 32, 64>}, {pipeline_mode = #tpu.pipeline_mode<synchronous>, transform_indices = @transform_14, window_bounds = array<i64: 1, 64>}, {pipeline_mode = #tpu.pipeline_mode<synchronous>, transform_indices = @transform_15, window_bounds = array<i64: 64, 32>}, {pipeline_mode = #tpu.pipeline_mode<synchronous>, transform_indices = @transform_16, window_bounds = array<i64: 1, 32>}, {transform_indices = @transform_17, window_bounds = array<i64: 1, 8, 32>}]} {
    %c8_i32 = arith.constant 8 : i32
    %0 = arith.muli %arg1, %c8_i32 : i32
    %1 = tpu.assume_multiple %0, 8 : i32
    %c0 = arith.constant 0 : index
    %c0_0 = arith.constant 0 : index
    %c0_1 = arith.constant 0 : index
    %2 = vector.load %arg2[%c0, %c0_0, %c0_1] : memref<1x8x32xf32, #tpu.memory_space<vmem>>, vector<1x8x32xf32>
    %3 = vector.shape_cast %2 : vector<1x8x32xf32> to vector<8x32xf32>
    %c0_2 = arith.constant 0 : index
    %4 = arith.index_cast %1 : i32 to index
    %c0_3 = arith.constant 0 : index
    %5 = vector.load %arg2[%c0_2, %4, %c0_3] : memref<1x8x32xf32, #tpu.memory_space<vmem>>, vector<1x8x32xf32>
    %6 = vector.shape_cast %5 : vector<1x8x32xf32> to vector<8x32xf32>
    %cst = arith.constant dense<0.000000e+00> : vector<8xf32>
    %7 = vector.multi_reduction <add>, %3, %cst [1] : vector<8x32xf32> to vector<8xf32>
    %8 = vector.shape_cast %7 : vector<8xf32> to vector<8x1xf32>
    %cst_4 = arith.constant 3.200000e+01 : f32
    %9 = vector.broadcast %cst_4 : f32 to vector<8x1xf32>
    %10 = arith.divf %8, %9 : vector<8x1xf32>
    %11 = vector.broadcast %10 : vector<8x1xf32> to vector<8x32xf32>
    %12 = arith.subf %3, %11 : vector<8x32xf32>
    %13 = arith.mulf %12, %12 : vector<8x32xf32>
    %cst_5 = arith.constant dense<0.000000e+00> : vector<8xf32>
    %14 = vector.multi_reduction <add>, %13, %cst_5 [1] : vector<8x32xf32> to vector<8xf32>
    %15 = vector.shape_cast %14 : vector<8xf32> to vector<8x1xf32>
    %cst_6 = arith.constant 3.200000e+01 : f32
    %16 = vector.broadcast %cst_6 : f32 to vector<8x1xf32>
    %17 = arith.divf %15, %16 : vector<8x1xf32>
    %18 = vector.broadcast %10 : vector<8x1xf32> to vector<8x32xf32>
    %19 = arith.subf %3, %18 : vector<8x32xf32>
    %cst_7 = arith.constant 9.99999974E-6 : f32
    %20 = vector.broadcast %cst_7 : f32 to vector<8x1xf32>
    %21 = arith.addf %17, %20 : vector<8x1xf32>
    %22 = math.rsqrt %21 : vector<8x1xf32>
    %23 = vector.broadcast %22 : vector<8x1xf32> to vector<8x32xf32>
    %24 = arith.mulf %19, %23 : vector<8x32xf32>
    %c0_8 = arith.constant 0 : index
    %c0_9 = arith.constant 0 : index
    %25 = vector.load %arg3[%c0_8, %c0_9] : memref<1x32xf32, #tpu.memory_space<vmem>>, vector<1x32xf32>
    %26 = vector.shape_cast %25 : vector<1x32xf32> to vector<32xf32>
    %27 = vector.shape_cast %26 : vector<32xf32> to vector<1x32xf32>
    %28 = vector.broadcast %27 : vector<1x32xf32> to vector<8x32xf32>
    %29 = arith.mulf %24, %28 : vector<8x32xf32>
    %c0_10 = arith.constant 0 : index
    %c0_11 = arith.constant 0 : index
    %30 = vector.load %arg4[%c0_10, %c0_11] : memref<1x32xf32, #tpu.memory_space<vmem>>, vector<1x32xf32>
    %31 = vector.shape_cast %30 : vector<1x32xf32> to vector<32xf32>
    %32 = vector.shape_cast %31 : vector<32xf32> to vector<1x32xf32>
    %33 = vector.broadcast %32 : vector<1x32xf32> to vector<8x32xf32>
    %34 = arith.addf %29, %33 : vector<8x32xf32>
    %cst_12 = arith.constant dense<0.000000e+00> : vector<8xf32>
    %35 = vector.multi_reduction <add>, %6, %cst_12 [1] : vector<8x32xf32> to vector<8xf32>
    %36 = vector.shape_cast %35 : vector<8xf32> to vector<8x1xf32>
    %cst_13 = arith.constant 3.200000e+01 : f32
    %37 = vector.broadcast %cst_13 : f32 to vector<8x1xf32>
    %38 = arith.divf %36, %37 : vector<8x1xf32>
    %39 = vector.broadcast %38 : vector<8x1xf32> to vector<8x32xf32>
    %40 = arith.subf %6, %39 : vector<8x32xf32>
    %41 = arith.mulf %40, %40 : vector<8x32xf32>
    %cst_14 = arith.constant dense<0.000000e+00> : vector<8xf32>
    %42 = vector.multi_reduction <add>, %41, %cst_14 [1] : vector<8x32xf32> to vector<8xf32>
    %43 = vector.shape_cast %42 : vector<8xf32> to vector<8x1xf32>
    %cst_15 = arith.constant 3.200000e+01 : f32
    %44 = vector.broadcast %cst_15 : f32 to vector<8x1xf32>
    %45 = arith.divf %43, %44 : vector<8x1xf32>
    %46 = vector.broadcast %38 : vector<8x1xf32> to vector<8x32xf32>
    %47 = arith.subf %6, %46 : vector<8x32xf32>
    %cst_16 = arith.constant 9.99999974E-6 : f32
    %48 = vector.broadcast %cst_16 : f32 to vector<8x1xf32>
    %49 = arith.addf %45, %48 : vector<8x1xf32>
    %50 = math.rsqrt %49 : vector<8x1xf32>
    %51 = vector.broadcast %50 : vector<8x1xf32> to vector<8x32xf32>
    %52 = arith.mulf %47, %51 : vector<8x32xf32>
    %c0_17 = arith.constant 0 : index
    %c0_18 = arith.constant 0 : index
    %53 = vector.load %arg3[%c0_17, %c0_18] : memref<1x32xf32, #tpu.memory_space<vmem>>, vector<1x32xf32>
    %54 = vector.shape_cast %53 : vector<1x32xf32> to vector<32xf32>
    %55 = vector.shape_cast %54 : vector<32xf32> to vector<1x32xf32>
    %56 = vector.broadcast %55 : vector<1x32xf32> to vector<8x32xf32>
    %57 = arith.mulf %52, %56 : vector<8x32xf32>
    %c0_19 = arith.constant 0 : index
    %c0_20 = arith.constant 0 : index
    %58 = vector.load %arg4[%c0_19, %c0_20] : memref<1x32xf32, #tpu.memory_space<vmem>>, vector<1x32xf32>
    %59 = vector.shape_cast %58 : vector<1x32xf32> to vector<32xf32>
    %60 = vector.shape_cast %59 : vector<32xf32> to vector<1x32xf32>
    %61 = vector.broadcast %60 : vector<1x32xf32> to vector<8x32xf32>
    %62 = arith.addf %57, %61 : vector<8x32xf32>
    %63 = arith.truncf %34 : vector<8x32xf32> to vector<8x32xbf16>
    %64 = arith.truncf %62 : vector<8x32xf32> to vector<8x32xbf16>
    %c0_21 = arith.constant 0 : index
    %c0_22 = arith.constant 0 : index
    %65 = vector.load %arg5[%c0_21, %c0_22] : memref<32x32xbf16, #tpu.memory_space<vmem>>, vector<32x32xbf16>
    %cst_23 = arith.constant dense<0.000000e+00> : vector<8x32xf32>
    %66 = tpu.matmul %64, %65, %cst_23 {dimension_numbers = #tpu.dot_dimension_numbers<[1], [0], [0], [1], [0, 0, 1, 1], [], []>} : vector<8x32xbf16>, vector<32x32xbf16>, vector<8x32xf32> -> vector<8x32xf32>
    %c0_24 = arith.constant 0 : index
    %c0_25 = arith.constant 0 : index
    %67 = vector.load %arg6[%c0_24, %c0_25] : memref<1x32xf32, #tpu.memory_space<vmem>>, vector<1x32xf32>
    %68 = vector.shape_cast %67 : vector<1x32xf32> to vector<32xf32>
    %69 = vector.shape_cast %68 : vector<32xf32> to vector<1x32xf32>
    %70 = vector.broadcast %69 : vector<1x32xf32> to vector<8x32xf32>
    %71 = arith.addf %66, %70 : vector<8x32xf32>
    %c0_26 = arith.constant 0 : index
    %c0_27 = arith.constant 0 : index
    %72 = vector.load %arg7[%c0_26, %c0_27] : memref<32x32xbf16, #tpu.memory_space<vmem>>, vector<32x32xbf16>
    %cst_28 = arith.constant dense<0.000000e+00> : vector<8x32xf32>
    %73 = tpu.matmul %63, %72, %cst_28 {dimension_numbers = #tpu.dot_dimension_numbers<[1], [0], [0], [1], [0, 0, 1, 1], [], []>} : vector<8x32xbf16>, vector<32x32xbf16>, vector<8x32xf32> -> vector<8x32xf32>
    %c0_29 = arith.constant 0 : index
    %c0_30 = arith.constant 0 : index
    %74 = vector.load %arg8[%c0_29, %c0_30] : memref<1x32xf32, #tpu.memory_space<vmem>>, vector<1x32xf32>
    %75 = vector.shape_cast %74 : vector<1x32xf32> to vector<32xf32>
    %76 = vector.shape_cast %75 : vector<32xf32> to vector<1x32xf32>
    %77 = vector.broadcast %76 : vector<1x32xf32> to vector<8x32xf32>
    %78 = arith.addf %73, %77 : vector<8x32xf32>
    %c0_31 = arith.constant 0 : index
    %c0_32 = arith.constant 0 : index
    %79 = vector.load %arg9[%c0_31, %c0_32] : memref<32x32xbf16, #tpu.memory_space<vmem>>, vector<32x32xbf16>
    %cst_33 = arith.constant dense<0.000000e+00> : vector<8x32xf32>
    %80 = tpu.matmul %63, %79, %cst_33 {dimension_numbers = #tpu.dot_dimension_numbers<[1], [0], [0], [1], [0, 0, 1, 1], [], []>} : vector<8x32xbf16>, vector<32x32xbf16>, vector<8x32xf32> -> vector<8x32xf32>
    %c0_34 = arith.constant 0 : index
    %c0_35 = arith.constant 0 : index
    %81 = vector.load %arg10[%c0_34, %c0_35] : memref<1x32xf32, #tpu.memory_space<vmem>>, vector<1x32xf32>
    %82 = vector.shape_cast %81 : vector<1x32xf32> to vector<32xf32>
    %83 = vector.shape_cast %82 : vector<32xf32> to vector<1x32xf32>
    %84 = vector.broadcast %83 : vector<1x32xf32> to vector<8x32xf32>
    %85 = arith.addf %80, %84 : vector<8x32xf32>
    %cst_36 = arith.constant 0.353553385 : f32
    %86 = vector.broadcast %cst_36 : f32 to vector<8x32xf32>
    %87 = arith.mulf %71, %86 : vector<8x32xf32>
    %88 = arith.truncf %87 : vector<8x32xf32> to vector<8x32xbf16>
    %89 = vector.shape_cast %88 : vector<8x32xbf16> to vector<8x4x8xbf16>
    %90 = arith.truncf %78 : vector<8x32xf32> to vector<8x32xbf16>
    %91 = vector.shape_cast %90 : vector<8x32xbf16> to vector<8x4x8xbf16>
    %92 = arith.truncf %85 : vector<8x32xf32> to vector<8x32xbf16>
    %93 = vector.shape_cast %92 : vector<8x32xbf16> to vector<8x4x8xbf16>
    "tpu.trace_start"() <{level = 10 : i32, message = "qhd,khd->hqk"}> : () -> ()
    %cst_37 = arith.constant dense<0.000000e+00> : vector<4x8x8xf32>
    %94 = tpu.matmul %89, %91, %cst_37 {dimension_numbers = #tpu.dot_dimension_numbers<[2], [2], [0], [0], [0, 1, 0, 0, 1, 0], [1], [1]>} : vector<8x4x8xbf16>, vector<8x4x8xbf16>, vector<4x8x8xf32> -> vector<4x8x8xf32>
    "tpu.trace_stop"() : () -> ()
    %95 = tpu.iota {dimensions = array<i32: 0>} : vector<8x8xi32>
    %96 = vector.broadcast %1 : i32 to vector<8x8xi32>
    %97 = arith.addi %96, %95 : vector<8x8xi32>
    %98 = tpu.iota {dimensions = array<i32: 1>} : vector<8x8xi32>
    %99 = arith.cmpi sgt, %98, %97 : vector<8x8xi32>
    %cst_38 = arith.constant -1.000000e+30 : f32
    %cst_39 = arith.constant 0.000000e+00 : f32
    %100 = vector.broadcast %cst_38 : f32 to vector<8x8xf32>
    %101 = vector.broadcast %cst_39 : f32 to vector<8x8xf32>
    %102 = arith.select %99, %100, %101 : vector<8x8xi1>, vector<8x8xf32>
    %103 = vector.shape_cast %102 : vector<8x8xf32> to vector<1x8x8xf32>
    %104 = vector.broadcast %103 : vector<1x8x8xf32> to vector<4x8x8xf32>
    %105 = arith.addf %94, %104 : vector<4x8x8xf32>
    %cst_40 = arith.constant dense<0xFF800000> : vector<4x8xf32>
    %106 = vector.multi_reduction <maximumf>, %105, %cst_40 [2] : vector<4x8x8xf32> to vector<4x8xf32>
    %107 = vector.shape_cast %106 : vector<4x8xf32> to vector<4x8x1xf32>
    %108 = vector.broadcast %107 : vector<4x8x1xf32> to vector<4x8x8xf32>
    %109 = arith.subf %105, %108 : vector<4x8x8xf32>
    %110 = math.exp %109 : vector<4x8x8xf32>
    %cst_41 = arith.constant dense<0.000000e+00> : vector<4x8xf32>
    %111 = vector.multi_reduction <add>, %110, %cst_41 [2] : vector<4x8x8xf32> to vector<4x8xf32>
    %112 = vector.shape_cast %111 : vector<4x8xf32> to vector<4x8x1xf32>
    %113 = tpu.reciprocal %112 {approx = true} : vector<4x8x1xf32> -> vector<4x8x1xf32>
    %114 = vector.broadcast %113 : vector<4x8x1xf32> to vector<4x8x8xf32>
    %115 = arith.mulf %110, %114 : vector<4x8x8xf32>
    %116 = arith.truncf %115 : vector<4x8x8xf32> to vector<4x8x8xbf16>
    "tpu.trace_start"() <{level = 10 : i32, message = "hqk,khd->qhd"}> : () -> ()
    %cst_42 = arith.constant dense<0.000000e+00> : vector<4x8x8xf32>
    %117 = tpu.matmul %93, %116, %cst_42 {dimension_numbers = #tpu.dot_dimension_numbers<[0], [2], [2], [1], [0, 1, 0, 2, 1, 1], [1], [0]>} : vector<8x4x8xbf16>, vector<4x8x8xbf16>, vector<4x8x8xf32> -> vector<4x8x8xf32>
    %118 = tpu.transpose %117, [2, 0, 1] : vector<4x8x8xf32> -> vector<8x4x8xf32>
    "tpu.trace_stop"() : () -> ()
    %119 = vector.shape_cast %118 : vector<8x4x8xf32> to vector<8x32xf32>
    %120 = arith.truncf %119 : vector<8x32xf32> to vector<8x32xbf16>
    %c0_43 = arith.constant 0 : index
    %c0_44 = arith.constant 0 : index
    %121 = vector.load %arg11[%c0_43, %c0_44] : memref<32x32xbf16, #tpu.memory_space<vmem>>, vector<32x32xbf16>
    %cst_45 = arith.constant dense<0.000000e+00> : vector<8x32xf32>
    %122 = tpu.matmul %120, %121, %cst_45 {dimension_numbers = #tpu.dot_dimension_numbers<[1], [0], [0], [1], [0, 0, 1, 1], [], []>} : vector<8x32xbf16>, vector<32x32xbf16>, vector<8x32xf32> -> vector<8x32xf32>
    %c0_46 = arith.constant 0 : index
    %c0_47 = arith.constant 0 : index
    %123 = vector.load %arg12[%c0_46, %c0_47] : memref<1x32xf32, #tpu.memory_space<vmem>>, vector<1x32xf32>
    %124 = vector.shape_cast %123 : vector<1x32xf32> to vector<32xf32>
    %125 = vector.shape_cast %124 : vector<32xf32> to vector<1x32xf32>
    %126 = vector.broadcast %125 : vector<1x32xf32> to vector<8x32xf32>
    %127 = arith.addf %122, %126 : vector<8x32xf32>
    %128 = arith.addf %6, %127 : vector<8x32xf32>
    %cst_48 = arith.constant dense<0.000000e+00> : vector<8xf32>
    %129 = vector.multi_reduction <add>, %128, %cst_48 [1] : vector<8x32xf32> to vector<8xf32>
    %130 = vector.shape_cast %129 : vector<8xf32> to vector<8x1xf32>
    %cst_49 = arith.constant 3.200000e+01 : f32
    %131 = vector.broadcast %cst_49 : f32 to vector<8x1xf32>
    %132 = arith.divf %130, %131 : vector<8x1xf32>
    %133 = vector.broadcast %132 : vector<8x1xf32> to vector<8x32xf32>
    %134 = arith.subf %128, %133 : vector<8x32xf32>
    %135 = arith.mulf %134, %134 : vector<8x32xf32>
    %cst_50 = arith.constant dense<0.000000e+00> : vector<8xf32>
    %136 = vector.multi_reduction <add>, %135, %cst_50 [1] : vector<8x32xf32> to vector<8xf32>
    %137 = vector.shape_cast %136 : vector<8xf32> to vector<8x1xf32>
    %cst_51 = arith.constant 3.200000e+01 : f32
    %138 = vector.broadcast %cst_51 : f32 to vector<8x1xf32>
    %139 = arith.divf %137, %138 : vector<8x1xf32>
    %140 = vector.broadcast %132 : vector<8x1xf32> to vector<8x32xf32>
    %141 = arith.subf %128, %140 : vector<8x32xf32>
    %cst_52 = arith.constant 9.99999974E-6 : f32
    %142 = vector.broadcast %cst_52 : f32 to vector<8x1xf32>
    %143 = arith.addf %139, %142 : vector<8x1xf32>
    %144 = math.rsqrt %143 : vector<8x1xf32>
    %145 = vector.broadcast %144 : vector<8x1xf32> to vector<8x32xf32>
    %146 = arith.mulf %141, %145 : vector<8x32xf32>
    %c0_53 = arith.constant 0 : index
    %c0_54 = arith.constant 0 : index
    %147 = vector.load %arg13[%c0_53, %c0_54] : memref<1x32xf32, #tpu.memory_space<vmem>>, vector<1x32xf32>
    %148 = vector.shape_cast %147 : vector<1x32xf32> to vector<32xf32>
    %149 = vector.shape_cast %148 : vector<32xf32> to vector<1x32xf32>
    %150 = vector.broadcast %149 : vector<1x32xf32> to vector<8x32xf32>
    %151 = arith.mulf %146, %150 : vector<8x32xf32>
    %c0_55 = arith.constant 0 : index
    %c0_56 = arith.constant 0 : index
    %152 = vector.load %arg14[%c0_55, %c0_56] : memref<1x32xf32, #tpu.memory_space<vmem>>, vector<1x32xf32>
    %153 = vector.shape_cast %152 : vector<1x32xf32> to vector<32xf32>
    %154 = vector.shape_cast %153 : vector<32xf32> to vector<1x32xf32>
    %155 = vector.broadcast %154 : vector<1x32xf32> to vector<8x32xf32>
    %156 = arith.addf %151, %155 : vector<8x32xf32>
    %157 = arith.truncf %156 : vector<8x32xf32> to vector<8x32xbf16>
    %c0_57 = arith.constant 0 : index
    %c0_58 = arith.constant 0 : index
    %158 = vector.load %arg15[%c0_57, %c0_58] : memref<32x64xbf16, #tpu.memory_space<vmem>>, vector<32x64xbf16>
    %cst_59 = arith.constant dense<0.000000e+00> : vector<8x64xf32>
    %159 = tpu.matmul %157, %158, %cst_59 {dimension_numbers = #tpu.dot_dimension_numbers<[1], [0], [0], [1], [0, 0, 1, 1], [], []>} : vector<8x32xbf16>, vector<32x64xbf16>, vector<8x64xf32> -> vector<8x64xf32>
    %c0_60 = arith.constant 0 : index
    %c0_61 = arith.constant 0 : index
    %160 = vector.load %arg16[%c0_60, %c0_61] : memref<1x64xf32, #tpu.memory_space<vmem>>, vector<1x64xf32>
    %161 = vector.shape_cast %160 : vector<1x64xf32> to vector<64xf32>
    %162 = vector.shape_cast %161 : vector<64xf32> to vector<1x64xf32>
    %163 = vector.broadcast %162 : vector<1x64xf32> to vector<8x64xf32>
    %164 = arith.addf %159, %163 : vector<8x64xf32>
    %cst_62 = arith.constant 0.000000e+00 : f32
    %165 = vector.broadcast %cst_62 : f32 to vector<8x64xf32>
    %166 = arith.maximumf %164, %165 : vector<8x64xf32>
    %167 = arith.truncf %166 : vector<8x64xf32> to vector<8x64xbf16>
    %c0_63 = arith.constant 0 : index
    %c0_64 = arith.constant 0 : index
    %168 = vector.load %arg17[%c0_63, %c0_64] : memref<64x32xbf16, #tpu.memory_space<vmem>>, vector<64x32xbf16>
    %cst_65 = arith.constant dense<0.000000e+00> : vector<8x32xf32>
    %169 = tpu.matmul %167, %168, %cst_65 {dimension_numbers = #tpu.dot_dimension_numbers<[1], [0], [0], [1], [0, 0, 1, 1], [], []>} : vector<8x64xbf16>, vector<64x32xbf16>, vector<8x32xf32> -> vector<8x32xf32>
    %c0_66 = arith.constant 0 : index
    %c0_67 = arith.constant 0 : index
    %170 = vector.load %arg18[%c0_66, %c0_67] : memref<1x32xf32, #tpu.memory_space<vmem>>, vector<1x32xf32>
    %171 = vector.shape_cast %170 : vector<1x32xf32> to vector<32xf32>
    %172 = vector.shape_cast %171 : vector<32xf32> to vector<1x32xf32>
    %173 = vector.broadcast %172 : vector<1x32xf32> to vector<8x32xf32>
    %174 = arith.addf %169, %173 : vector<8x32xf32>
    %175 = arith.addf %128, %174 : vector<8x32xf32>
    %c0_68 = arith.constant 0 : index
    %c0_69 = arith.constant 0 : index
    %c0_70 = arith.constant 0 : index
    %176 = vector.load %arg19[%c0_68, %c0_69, %c0_70] : memref<1x8x32xf32, #tpu.memory_space<vmem>>, vector<1x8x32xf32>
    %177 = vector.shape_cast %176 : vector<1x8x32xf32> to vector<8x32xf32>
    %178 = vector.shape_cast %175 : vector<8x32xf32> to vector<1x8x32xf32>
    tpu.vector_store %arg19[%c0_68, %c0_69, %c0_70], %178 {strides = array<i32>} : memref<1x8x32xf32, #tpu.memory_space<vmem>>, vector<1x8x32xf32>,
    return
  }
  func.func @transform_0(%arg0: i32, %arg1: i32) -> (i32, i32, i32) {
    %c0_i32 = arith.constant 0 : i32
    %c0_i32_0 = arith.constant 0 : i32
    %c0_i32_1 = arith.constant 0 : i32
    return %arg0, %c0_i32, %c0_i32_0 : i32, i32, i32
  }
  func.func @transform_1(%arg0: i32, %arg1: i32) -> (i32, i32) {
    %c0_i32 = arith.constant 0 : i32
    %c0_i32_0 = arith.constant 0 : i32
    %c0_i32_1 = arith.constant 0 : i32
    return %c0_i32, %c0_i32_0 : i32, i32
  }
  func.func @transform_2(%arg0: i32, %arg1: i32) -> (i32, i32) {
    %c0_i32 = arith.constant 0 : i32
    %c0_i32_0 = arith.constant 0 : i32
    %c0_i32_1 = arith.constant 0 : i32
    return %c0_i32, %c0_i32_0 : i32, i32
  }
  func.func @transform_3(%arg0: i32, %arg1: i32) -> (i32, i32) {
    %c0_i32 = arith.constant 0 : i32
    %c0_i32_0 = arith.constant 0 : i32
    %c0_i32_1 = arith.constant 0 : i32
    return %c0_i32, %c0_i32_0 : i32, i32
  }
  func.func @transform_4(%arg0: i32, %arg1: i32) -> (i32, i32) {
    %c0_i32 = arith.constant 0 : i32
    %c0_i32_0 = arith.constant 0 : i32
    %c0_i32_1 = arith.constant 0 : i32
    return %c0_i32, %c0_i32_0 : i32, i32
  }
  func.func @transform_5(%arg0: i32, %arg1: i32) -> (i32, i32) {
    %c0_i32 = arith.constant 0 : i32
    %c0_i32_0 = arith.constant 0 : i32
    %c0_i32_1 = arith.constant 0 : i32
    return %c0_i32, %c0_i32_0 : i32, i32
  }
  func.func @transform_6(%arg0: i32, %arg1: i32) -> (i32, i32) {
    %c0_i32 = arith.constant 0 : i32
    %c0_i32_0 = arith.constant 0 : i32
    %c0_i32_1 = arith.constant 0 : i32
    return %c0_i32, %c0_i32_0 : i32, i32
  }
  func.func @transform_7(%arg0: i32, %arg1: i32) -> (i32, i32) {
    %c0_i32 = arith.constant 0 : i32
    %c0_i32_0 = arith.constant 0 : i32
    %c0_i32_1 = arith.constant 0 : i32
    return %c0_i32, %c0_i32_0 : i32, i32
  }
  func.func @transform_8(%arg0: i32, %arg1: i32) -> (i32, i32) {
    %c0_i32 = arith.constant 0 : i32
    %c0_i32_0 = arith.constant 0 : i32
    %c0_i32_1 = arith.constant 0 : i32
    return %c0_i32, %c0_i32_0 : i32, i32
  }
  func.func @transform_9(%arg0: i32, %arg1: i32) -> (i32, i32) {
    %c0_i32 = arith.constant 0 : i32
    %c0_i32_0 = arith.constant 0 : i32
    %c0_i32_1 = arith.constant 0 : i32
    return %c0_i32, %c0_i32_0 : i32, i32
  }
  func.func @transform_10(%arg0: i32, %arg1: i32) -> (i32, i32) {
    %c0_i32 = arith.constant 0 : i32
    %c0_i32_0 = arith.constant 0 : i32
    %c0_i32_1 = arith.constant 0 : i32
    return %c0_i32, %c0_i32_0 : i32, i32
  }
  func.func @transform_11(%arg0: i32, %arg1: i32) -> (i32, i32) {
    %c0_i32 = arith.constant 0 : i32
    %c0_i32_0 = arith.constant 0 : i32
    %c0_i32_1 = arith.constant 0 : i32
    return %c0_i32, %c0_i32_0 : i32, i32
  }
  func.func @transform_12(%arg0: i32, %arg1: i32) -> (i32, i32) {
    %c0_i32 = arith.constant 0 : i32
    %c0_i32_0 = arith.constant 0 : i32
    %c0_i32_1 = arith.constant 0 : i32
    return %c0_i32, %c0_i32_0 : i32, i32
  }
  func.func @transform_13(%arg0: i32, %arg1: i32) -> (i32, i32) {
    %c0_i32 = arith.constant 0 : i32
    %c0_i32_0 = arith.constant 0 : i32
    %c0_i32_1 = arith.constant 0 : i32
    return %c0_i32, %c0_i32_0 : i32, i32
  }
  func.func @transform_14(%arg0: i32, %arg1: i32) -> (i32, i32) {
    %c0_i32 = arith.constant 0 : i32
    %c0_i32_0 = arith.constant 0 : i32
    %c0_i32_1 = arith.constant 0 : i32
    return %c0_i32, %c0_i32_0 : i32, i32
  }
  func.func @transform_15(%arg0: i32, %arg1: i32) -> (i32, i32) {
    %c0_i32 = arith.constant 0 : i32
    %c0_i32_0 = arith.constant 0 : i32
    %c0_i32_1 = arith.constant 0 : i32
    return %c0_i32, %c0_i32_0 : i32, i32
  }
  func.func @transform_16(%arg0: i32, %arg1: i32) -> (i32, i32) {
    %c0_i32 = arith.constant 0 : i32
    %c0_i32_0 = arith.constant 0 : i32
    %c0_i32_1 = arith.constant 0 : i32
    return %c0_i32, %c0_i32_0 : i32, i32
  }
  func.func @transform_17(%arg0: i32, %arg1: i32) -> (i32, i32, i32) {
    %c0_i32 = arith.constant 0 : i32
    %c0_i32_0 = arith.constant 0 : i32
    return %arg0, %arg1, %c0_i32 : i32, i32, i32
  }
}

</mosaic_0001>

<bundles_post_ra>
// kernel: tpu_custom_call.1
= control target key start
LH: loop header
LB: loop body
LE: loop exit
PB: predicated region body
PF: predicated region fallthrough
CT: control target
= control target key end

     0   :  { %s2584_s0 = inlined_call_operand.vmem [shape: f32[2,8,32], index: 0, kind: input, shape index: {}]   ;;  %s2585_s1 = inlined_call_operand.hbm [shape: f32[1,32], index: 1, kind: input, shape index: {}]   ;;  %s2586_s2 = inlined_call_operand.vmem [shape: f32[1,32], index: 2, kind: input, shape index: {}]   ;;  %s2587_s3 = inlined_call_operand.vmem [shape: bf16[32,32], index: 3, kind: input, shape index: {}]   ;;  %s2588_s4 = inlined_call_operand.vmem [shape: f32[1,32], index: 4, kind: input, shape index: {}]   ;;  %s2589_s5 = inlined_call_operand.vmem [shape: bf16[32,32], index: 5, kind: input, shape index: {}]   ;;  %s2590_s6 = inlined_call_operand.vmem [shape: f32[1,32], index: 6, kind: input, shape index: {}]   ;;  %s2591_s7 = inlined_call_operand.hbm [shape: bf16[32,32], index: 7, kind: input, shape index: {}]   ;;  %s2592_s8 = inlined_call_operand.vmem [shape: f32[1,32], index: 8, kind: input, shape index: {}]   ;;  %s2593_s9 = inlined_call_operand.hbm [shape: bf16[32,32], index: 9, kind: input, shape index: {}]   ;;  %s2594_s10 = inlined_call_operand.vmem [shape: f32[1,32], index: 10, kind: input, shape index: {}]   ;;  %s2595_s11 = inlined_call_operand.vmem [shape: f32[1,32], index: 11, kind: input, shape index: {}]   ;;  %s2596_s12 = inlined_call_operand.vmem [shape: f32[1,32], index: 12, kind: input, shape index: {}]   ;;  %s2597_s13 = inlined_call_operand.hbm [shape: bf16[32,64], index: 13, kind: input, shape index: {}]   ;;  %s2598_s14 = inlined_call_operand.vmem [shape: f32[1,64], index: 14, kind: input, shape index: {}]   ;;  %s2599_s15 = inlined_call_operand.vmem [shape: bf16[64,32], index: 15, kind: input, shape index: {}]   ;;  %s2600_s16 = inlined_call_operand.vmem [shape: f32[1,32], index: 16, kind: input, shape index: {}]   ;;  %s2601_s17 = inlined_call_operand.hbm [shape: f32[2,8,32], index: 17, kind: output, shape index: {}]  }
   0x1   :  { %2613 = sst [smem:[#allocation24_spill]] %s2584_s0 }
   0x2   :  { %2614 = sst [smem:[#allocation25_spill]] %s2585_s1 }
   0x3   :  { %2615 = sst [smem:[#allocation26_spill]] %s2591_s7 }
   0x4   :  { %2616 = sst [smem:[#allocation27_spill]] %s2596_s12 }
   0x5   :  { %2617 = sst [smem:[#allocation28_spill]] %s2598_s14 }
   0x6   :  { %2618 = sst [smem:[#allocation29_spill]] %s2600_s16 }
   0x7   :  { %2619 = sst [smem:[#allocation30_spill]] %s2601_s17 }
   0x8   :  { %22 = vsyncpa [#allocation3], 0 }
   0x9   :  { %23 = vsyncpa [#allocation6], 0 }
   0xa   :  { %24 = vsyncpa [#allocation9], 0 }
   0xb   :  { %25 = vsyncpa [#allocation4], 0 }
   0xc   :  { %27 = vsyncpa [#allocation4 + $0x1], 0  ;;  %s2303_s24 = smov 0   ;;  %s2305_s25 = smov 0  }
   0xd   :  { %s2307_s26 = smov 0   ;;  %s2309_s27 = smov 0  }
   0xe   :  { %s2311_s28 = smov 0   ;;  %s2313_s29 = smov 0  }
   0xf LB: > { %2620 = sst [smem:[#allocation15_spill]] %s2175_s24  ;;  %s1716_s0 = sadd.s32 4294967295, %s2195_s29   ;;  %s2195_s29 = sphi %s2313_s29, %s33_s29   ;;  %s2191_s28 = sphi %s2311_s28, %s2650_s28   ;;  %s2187_s27 = sphi %s2309_s27, %s2649_s27   ;;  %s2183_s26 = sphi %s2307_s26, %s2648_s26   ;;  %s2179_s25 = sphi %s2305_s25, %s2647_s25   ;;  %s2175_s24 = sphi %s2303_s24, %s2646_s24  }
  0x10   : > { %2621 = sst [smem:[#allocation16_spill]] %s2179_s25  ;;  %s1717_s30 = sadd.s32 4294967294, %s2195_s29  }
  0x11   : > { %2622 = sst [smem:[#allocation17_spill]] %s2183_s26  ;;  %s45_s18 = sadd.s32 1, %s2191_s28 }
  0x12   : > { %2623 = sst [smem:[#allocation18_spill]] %s2191_s28  ;;  %s416_s19 = sadd.s32 1, %s2183_s26 }
  0x13   : > { %2624 = sst [smem:[#allocation19_spill]] %s2195_s29  ;;  %p47_p0 = scmp.ge.s32.totalorder %s45_s18, 2 }
  0x14   : > { %p426_p1 = scmp.ne.s32.totalorder %s2183_s26, %s2179_s25  ;;  %p427_p2 = scmp.eq.s32.totalorder %s1716_s0, 1 }
  0x15   : > { %p432_p3 = scmp.ne.s32.totalorder %s2179_s25, %s2175_s24  ;;  %s2652_s18 = smov (%p47_p0, %s45_s18), 0 }
  0x16   : > { %2625 = sst [smem:[#allocation20_spill]] %s2652_s18  ;;  %p2343_p4 = por %p427_p2, %p426_p1 }
  0x17   : > { %p433_p5 = scmp.eq.s32.totalorder %s1717_s30, 1  ;;  %s411_s20 = ssub.s32 %s2191_s28, %s2652_s18 }
  0x18   : > { %s2626_s1 = scalar_select %p2343_p4, 1, 0 }
  0x19   : > { %p1718_p6 = scmp.ge.s32.totalorder %s2195_s29, 1  ;;  %p414_p7 = scmp.eq.s32.totalorder %s411_s20, 0 }
  0x1a   : > { %2627 = sst [smem:[#allocation21_spill]] %s2626_s1  ;;  %p2350_p8 = por %p433_p5, %p432_p3 }
  0x1b   : > { %p440_p9 = scmp.lt.s32.totalorder %s2195_s29, 3  ;;  %p2362_p11 = scmp.eq.s32.totalorder %s1716_s0, 0 }
  0x1c   : > { %s2628_s21 = scalar_select %p2350_p8, 1, 0 }
  0x1d   : > { %s2356_s22 = scalar_select %p414_p7, %s2183_s26, %s416_s19  }
  0x1e   : > { %2629 = sst [smem:[#allocation22_spill]] %s2628_s21  ;;  %p2358_p10 = pnand %p1718_p6, %p440_p9 }
  0x1f   : > { %2630 = sst [smem:[#allocation23_spill]] %s2356_s22  ;;  %s2197_s28 = smov [#allocation5]  }
  0x20   : > { %s2633_s7 = sld [smem:[#allocation26_spill]]  ;;  %p1837_p12 = pneg %p2358_p10 }
  0x21   : > { %s480_s19 = sshll.u32 %s2197_s28, 4  ;;  %s2198_s0 = smov 64   ;;  %s481_s19 = int_to_ptr.vmem [resolvable:$true] %s480_s19 }
  0x22   : > { %p2373_p13 = pnand %p2362_p11, %p1837_p12  ;;  %s2199_s26 = smov 4  }
  0x23   : > { %s2200_s28 = smov [#allocation2]   ;;  %s495_s16 = sshll.u32 %s2593_s9, 4  ;;  %s496_s16 = int_to_ptr.hbm [resolvable:$true] %s495_s16 }
  0x24   : > { %s454_s29 = sshll.u32 %s2200_s28, 4  ;;  %s2201_s14 = smov [#allocation7]   ;;  %s455_s29 = int_to_ptr.vmem [resolvable:$true] %s454_s29 }
  0x25   : > { %s497_s25 = sshll.u32 %s2201_s14, 4  ;;  %s498_s25 = int_to_ptr.vmem [resolvable:$true] %s497_s25 }
  0x26   : > { %s478_s20 = sshll.u32 %s2633_s7, 4  ;;  %s2635_s7 = sld [smem:[#allocation25_spill]]  ;;  %s479_s20 = int_to_ptr.hbm [resolvable:$true] %s478_s20 }
  0x27   : > { %1843 = dma.hbm_to_vmem [thread:$0]  (!%p2373_p13), %s479_s20, 256, %s481_s19, [#allocation6], %s2198_s0, %s2198_s0, %s2199_s26  }
  0x28   : > { %s518_s19 = sshll.u32 %s2597_s13, 4  ;;  %s519_s19 = int_to_ptr.hbm [resolvable:$true] %s518_s19 }
  0x29   : > { %1846 = dma.hbm_to_vmem [thread:$0]  (!%p2373_p13), %s496_s16, 256, %s498_s25, [#allocation6], %s2198_s0, %s2198_s0, %s2199_s26  }
  0x2b   : > { %552 = sbr.rel (%p2358_p10) target bundleno = 2357 (0x935), region = 88 }
  0x2c   : > { %s452_s21 = sshll.u32 %s2635_s7, 4  ;;  %s2202_s7 = smov [#allocation8]   ;;  %s453_s21 = int_to_ptr.hbm [resolvable:$true] %s452_s21 }
  0x2d   : > { %1840 = dma.hbm_to_vmem [thread:$0]  (!%p2373_p13), %s453_s21, 16, %s455_s29, [#allocation3]  }
  0x2e   : > { %s520_s18 = sshll.u32 %s2202_s7, 4  ;;  %s521_s18 = int_to_ptr.vmem [resolvable:$true] %s520_s18 }
  0x2f   : > { %1849 = dma.hbm_to_vmem [thread:$0]  (!%p2373_p13), %s519_s19, 256, %s521_s18, [#allocation9], %s2198_s0, %s2198_s0, %s2199_s26  }
  0x30   : > { %2158 = dma.done.wait (%p2362_p11), [#allocation3], 16  }
  0x31   : > { %2160 = vsyncadd (%p2362_p11), [#allocation3], 4294967280 }
  0x32   : > { %2162 = dma.done.wait (%p2362_p11), [#allocation6], 512  }
  0x33   : > { %2164 = vsyncadd (%p2362_p11), [#allocation6], 4294966784 }
  0x34   : > { %2166 = dma.done.wait (%p2362_p11), [#allocation9], 256  }
  0x35   : > { %2168 = vsyncadd (%p2362_p11), [#allocation9], 4294967040  ;;  %p619_p0 = scmp.lt.s32.totalorder %s2187_s27, 1  ;;  %s2636_s25 = sld [smem:[#allocation24_spill]]  ;;  %vm628_vm0 = vcmask 261120   ;;  %v2203_v2 = vmov 32.0  }
  0x36   : > { %1961 = vrcp.f32 %v2203_v2  ;;  %v1808_v19 = vld [vmem:[%s2589_s5 + $0x8] sm:$0xff]  ;;  %v1807_v21 = vld [vmem:[%s2589_s5] sm:$0xff]  ;;  %s2204_s18 = smov 104   ;;  %s2206_s17 = smov 112   ;;  %vm906_vm8 = vcmask 1043456   ;;  %vm902_vm9 = vcmask 64512  }
  0x37   : > { %s620_s12 = scalar_select %p619_p0, %s2187_s27, 1  ;;  %v1810_v20 = vld [vmem:[#allocation5 + $0x8] sm:$0xff]  ;;  %759 = vmatpush.bf16.msra.mxu1 %v1808_v19  ;;  %v1809_v22 = vld [vmem:[#allocation5] sm:$0xff]  ;;  %v1951_v39 = vld [vmem:[#allocation2] ss:$0 sm:$0xff]  ;;  %vm1297_vm11 = vcmask 1047556  }
  0x38   : > { %792 = vmatpush.bf16.msra.mxu2 %v1810_v20  ;;  %v1806_v23 = vld [vmem:[%s2587_s3 + $0x8] sm:$0xff]  ;;  %v1805_v25 = vld [vmem:[%s2587_s3] sm:$0xff]  ;;  %v830_v20 = vlaneseq  ;;  %s2210_s24 = smov 16   ;;  %s2211_s29 = smov 24   ;;  %vm1420_vm12 = vcmask 130048   ;;  %vm1422_vm13 = vcmask 195584  }
  0x39   : > { %s1730_s14 = sshll.u32 %s620_s12, 3  ;;  %723 = vmatpush.bf16.msra.mxu0 %v1806_v23  ;;  %v1952_v43 = vld [vmem:[%s2586_s2] ss:$0 sm:$0xff]  ;;  %s2205_s12 = smov 120   ;;  %v2207_v23 = vmov 0.0  }
  0x3a   : > { %v1953_v55 = vld [vmem:[%s2590_s6] ss:$0 sm:$0xff]  ;;  %s2212_s1 = smov 8   ;;  %s1802_s23 = sshll.u32 %s2187_s27, 3 }
  0x3b   : > { %s622_s26 = scalar_lea.vmem %s2636_s25, %s1730_s14  ;;  %760 = vmatpush.bf16.msra.mxu1 %v1807_v21  ;;  %v1955_v60 = vld [vmem:[%s2588_s4] ss:$0 sm:$0xff]  ;;  %v831_v21 = vshrl.u32 %v830_v20, 7  ;;  %s2638_s14 = sld [smem:[#allocation16_spill]] }
  0x3c   : > { %v2413_v0 = vld [vmem:[%s622_s26] sm:$0xff]  ;;  %v1962_v3 = vpop.eup %1961  ;;  %793 = vmatpush.bf16.msra.mxu2 %v1809_v22  ;;  %v835_v22 = vand.u32 127, %v830_v20  ;;  %s2640_s28 = sld [smem:[#allocation29_spill]] }
  0x3d   : > { %v629_v1 = vsel %vm628_vm0, %v2413_v0, 0.0  ;;  %v633_v4 = vmul.f32 32.0, %v1962_v3  ;;  %vm637_vm1 = vweird.f32 %v1962_v3  ;;  %724 = vmatpush.bf16.msra.mxu0 %v1805_v25  ;;  %s2641_s7 = sld [smem:[#allocation30_spill]] }
  0x3e   : > { %630 = vadd.xlane.f32.xlu0 %v629_v1  ;;  %vm836_vm10 = vcmp.gt.s32.totalorder %v835_v22, %v831_v21 }
  0x3f   : > { %v634_v5 = vsub.f32 1.0, %v633_v4 }
  0x41   : > { %v635_v6 = vmul.f32 %v1962_v3, %v634_v5  ;;  %s616_s21 = sand.u32 1, %s2638_s14  }
  0x42   : > { %s1729_s22 = sshll.u32 %s616_s21, 3  ;;  %s1589_s27 = scalar_lea.sflag [#allocation4], %s616_s21 }
  0x43   : > { %v636_v7 = vadd.f32 %v1962_v3, %v635_v6  ;;  %s618_s16 = scalar_lea.vmem [#allocation10], %s1729_s22 }
  0x45   : > { %v2417_v8 = vsel %vm637_vm1, %v1962_v3, %v636_v7 }
  0x46   : > { %669 = vadd.xlane.f32.xlu0 %v629_v1 }
  0xb1   : > { %v631_v9 = vpop.xlane.xlu0 %630 }
  0xb2   : > { %v639_v10 = vmul.f32 %v2417_v8, %v631_v9 }
  0xb4   : > { %v640_v11 = vsub.f32 %v2413_v0, %v639_v10 }
  0xb6   : > { %v641_v12 = vmul.f32 %v640_v11, %v640_v11 }
  0xb8   : > { %v642_v13 = vsel %vm628_vm0, %v641_v12, 0.0 }
  0xb9   : > { %643 = vadd.xlane.f32.xlu1 %v642_v13  ;;  %v670_v14 = vpop.xlane.xlu0 %669 }
  0xba   : > { %v671_v15 = vmul.f32 %v670_v14, %v2417_v8 }
  0xbc   : > { %v672_v16 = vsub.f32 %v2413_v0, %v671_v15 }
  0xbe   : > { %v673_v17 = vmul.f32 %v672_v16, %v672_v16 }
  0xc0   : > { %v674_v18 = vsel %vm628_vm0, %v673_v17, 0.0 }
  0xc1   : > { %675 = vadd.xlane.f32.xlu1 %v674_v18 }
 0x12c   : > { %v644_v24 = vpop.xlane.xlu1 %643 }
 0x12d   : > { %v645_v26 = vmul.f32 %v644_v24, %v2417_v8  ;;  %v837_v24 = vsel %vm836_vm10, -1e+30, %v2207_v23 }
 0x12f   : > { %v646_v27 = vadd.f32 1e-05, %v645_v26 }
 0x131   : > { %1963 = vrsqrt.f32 %v646_v27  ;;  %vm653_vm3 = vweird.f32 %v646_v27 }
 0x134   : > { %v676_v28 = vpop.xlane.xlu1 %675 }
 0x135   : > { %v677_v29 = vmul.f32 %v676_v28, %v2417_v8 }
 0x137   : > { %v1964_v30 = vpop.eup %1963  ;;  %v678_v31 = vadd.f32 1e-05, %v677_v29  ;;  %v1954_v29 = vld [vmem:[%s2592_s8] ss:$0 sm:$0xff] }
 0x138   : > { %v648_v32 = vmul.f32 %v1964_v30, %v646_v27  ;;  %vm654_vm2 = vweird.f32 %v1964_v30 }
 0x139   : > { %1965 = vrsqrt.f32 %v678_v31  ;;  %vm655_vm4 = vmor %vm653_vm3, %vm654_vm2  ;;  %vm685_vm5 = vweird.f32 %v678_v31  ;;  %vm1569_vm2 = vcmask 523264  }
 0x13a   : > { %v649_v33 = vmul.f32 %v1964_v30, %v648_v32 }
 0x13c   : > { %v650_v34 = vmul.f32 0.5, %v649_v33 }
 0x13e   : > { %v651_v35 = vsub.f32 1.5, %v650_v34 }
 0x13f   : > { %v1966_v36 = vpop.eup %1965 }
 0x140   : > { %v652_v37 = vmul.f32 %v1964_v30, %v651_v35  ;;  %v680_v38 = vmul.f32 %v1966_v36, %v678_v31  ;;  %vm686_vm6 = vweird.f32 %v1966_v36 }
 0x141   : > { %vm687_vm7 = vmor %vm685_vm5, %vm686_vm6 }
 0x142   : > { %v656_v40 = vsel %vm655_vm4, %v1964_v30, %v652_v37  ;;  %v681_v41 = vmul.f32 %v1966_v36, %v680_v38 }
 0x143   : > { %v657_v42 = vmul.f32 %v656_v40, %v640_v11 }
 0x144   : > { %v682_v44 = vmul.f32 0.5, %v681_v41 }
 0x145   : > { %v662_v45 = vmul.f32 %v1951_v39, %v657_v42 }
 0x146   : > { %v683_v46 = vsub.f32 1.5, %v682_v44 }
 0x147   : > { %v667_v47 = vadd.f32 %v1952_v43, %v662_v45 }
 0x148   : > { %v684_v48 = vmul.f32 %v1966_v36, %v683_v46 }
 0x149   : > { %v692_v49 = vpack.c.bf16 %v667_v47, %v667_v47 }
 0x14a   : > { %v688_v50 = vsel %vm687_vm7, %v1966_v36, %v684_v48 }
 0x14b   : > { %1748 = vmatmul.msk.bf16.vlgmr.msra.gmra.mxu1 %vm628_vm0, %v692_v49  ;;  %1757 = vmatmul.msk.bf16.vlgmr.msra.gmra.mxu2 %vm628_vm0, %v692_v49  ;;  %v689_v51 = vmul.f32 %v688_v50, %v672_v16 }
 0x14d   : > { %v690_v52 = vmul.f32 %v1951_v39, %v689_v51 }
 0x14f   : > { %v691_v53 = vadd.f32 %v1952_v43, %v690_v52 }
 0x151   : > { %v693_v54 = vpack.c.bf16 %v691_v53, %v691_v53 }
 0x153   : > { %1739 = vmatmul.msk.bf16.vlgmr.msra.gmra.mxu0 %vm628_vm0, %v693_v54 }
 0x1c8   : > { %v762_v56 = vpop.f32.mrf.mxu1 }
 0x1c9   : > { %v763_v57 = vadd.f32 %v1953_v55, %v762_v56 }
 0x1cb   : > { %v808_v58 = vpack.c.bf16 %v763_v57, %v763_v57 }
 0x1cd   : > { %816 = vrot.lane.b32.xlu0 %v808_v58, %s2204_s18  ;;  %810 = vrot.lane.b32.xlu2 %v808_v58, %s2205_s12 }
 0x1ce   : > { %838 = vxpose.xlu1.c.b16.start.end [1/1] (short) (narrow) %v808_v58, 16  ;;  %v795_v59 = vpop.f32.mrf.mxu2 }
 0x1cf   : > { %v796_v30 = vadd.f32 %v1954_v29, %v795_v59 }
 0x1d0   : > { %v726_v61 = vpop.f32.mrf.mxu0  ;;  %v764_v62 = vpop.f32.mrf.mxu1 }
 0x1d1   : > { %v727_v63 = vadd.f32 %v1955_v60, %v726_v61  ;;  %v819_v31 = vpack.c.bf16 %v796_v30, %v796_v30 }
 0x1d3   : > { %v799_v2 = vmul.f32 0.35355338, %v727_v63 }
 0x1d5   : > { %813 = vrot.lane.b32.xlu2 %v808_v58, %s2206_s17  ;;  %v800_v4 = vpack.c.bf16 %v799_v2, %v799_v2 }
 0x1d6   : > { %v797_v1 = vpop.f32.mrf.mxu2 }
 0x1d8   : > { %v728_v3 = vpop.f32.mrf.mxu0 }
 0x1dd   : > { %802 = vrot.lane.b32.xlu2 %v800_v4, %s2205_s12 }
 0x1e5   : > { %804 = vrot.lane.b32.xlu2 %v800_v4, %s2206_s17 }
 0x1ed   : > { %806 = vrot.lane.b32.xlu2 %v800_v4, %s2204_s18 }
 0x227   : > { %v811_v5 = vpop.permute.xlu2 %810 }
 0x22f   : > { %v814_v6 = vpop.permute.xlu2 %813 }
 0x230   : > { %1928 = vxpose.binary.xlu0.c.b16.start.end [1/2] (short) (narrow) %v814_v6, %v811_v5, 16 }
 0x237   : > { %v803_v11 = vpop.permute.xlu2 %802 }
 0x23f   : > { %v817_v7 = vpop.permute.xlu0 %816  ;;  %v805_v12 = vpop.permute.xlu2 %804 }
 0x240   : > { %886 = vxpose.xlu2.c.b16.start.end [1/1] (short) (narrow) %v817_v7, 16 }
 0x247   : > { %v807_v13 = vpop.permute.xlu2 %806 }
 0x27a   : > { %v846_v9 = vpop.trf.xlu1 }
 0x27b   : > { %v908_v10 = vsel %vm906_vm8, %v846_v9, 0 }
 0x27c   : > { %917 = vmatpush.bf16.msra.mxu3 %v908_v10 }
 0x27f   : > { %1758 = vmatmul.msk.bf16.vlgmr.msra.gmra.mxu3 %vm902_vm9, %v800_v4 }
 0x2dc   : > { %v1929_v14 = vpop.trf.xlu0 }
 0x2dd   : > { %v927_v15 = vsel %vm906_vm8, %v1929_v14, 0 }
 0x2de   : > { %936 = vmatpush.bf16.msrb.mxu3 %v927_v15 }
 0x2e1   : > { %v894_v16 = vpop.trf.xlu2  ;;  %1759 = vmatmul.msk.bf16.vlgmr.msrb.gmra.mxu3 %vm902_vm9, %v803_v11 }
 0x2e2   : > { %v965_v17 = vsel %vm906_vm8, %v894_v16, 0 }
 0x2e3   : > { %974 = vmatpush.bf16.msrb.mxu1 %v965_v17 }
 0x2e4   : > { %v1930_v18 = vpop.trf.xlu0 }
 0x2e5   : > { %v946_v19 = vsel %vm906_vm8, %v1930_v18, 0 }
 0x2e6   : > { %955 = vmatpush.bf16.msrb.mxu0 %v946_v19  ;;  %1761 = vmatmul.msk.bf16.vlgmr.msrb.gmra.mxu1 %vm902_vm9, %v807_v13 }
 0x2e9   : > { %1760 = vmatmul.msk.bf16.vlgmr.msrb.gmra.mxu0 %vm902_vm9, %v805_v12 }
 0x302   : > { %v919_v25 = vpop.f32.mrf.mxu3 }
 0x303   : > { %v920_v26 = vadd.f32 %v919_v25, %v837_v24 }
 0x305   : > { %v980_v27 = vsel %vm902_vm9, %v920_v26, -inf }
 0x306   : > { %981 = vmax.xlane.f32.xlu0 %v980_v27 }
 0x30a   : > { %v921_v28 = vpop.f32.mrf.mxu3 }
 0x31a   : > { %821 = vrot.lane.b32.xlu0 %v819_v31, %s2205_s12  ;;  %s2637_s12 = sld [smem:[#allocation27_spill]] }
 0x363   : > { %v976_v32 = vpop.f32.mrf.mxu1 }
 0x364   : > { %v977_v33 = vadd.f32 %v976_v32, %v837_v24  ;;  %v938_v34 = vpop.f32.mrf.mxu3 }
 0x365   : > { %v939_v39 = vadd.f32 %v938_v34, %v837_v24 }
 0x366   : > { %v957_v35 = vpop.f32.mrf.mxu0  ;;  %v989_v36 = vsel %vm902_vm9, %v977_v33, -inf }
 0x367   : > { %v958_v37 = vadd.f32 %v957_v35, %v837_v24  ;;  %990 = vmax.xlane.f32.xlu1 %v989_v36  ;;  %v983_v43 = vsel %vm902_vm9, %v939_v39, -inf }
 0x369   : > { %v986_v38 = vsel %vm902_vm9, %v958_v37, -inf }
 0x36a   : > { %987 = vmax.xlane.f32.xlu2 %v986_v38 }
 0x36b   : > { %v978_v40 = vpop.f32.mrf.mxu1 }
 0x36c   : > { %v940_v41 = vpop.f32.mrf.mxu3 }
 0x36e   : > { %v959_v42 = vpop.f32.mrf.mxu0 }
 0x36f   : > { %984 = vmax.xlane.f32.xlu1 %v983_v43 }
 0x379   : > { %v982_v44 = vpop.xlane.xlu0 %981 }
 0x37a   : > { %v992_v45 = vsub.f32 %v920_v26, %v982_v44 }
 0x37c   : > { %v996_v46 = vmul.f32 1.442695, %v992_v45 }
 0x37e   : > { %1967 = vpow2.f32 %v996_v46  ;;  %v2209_v46 = vmov 1934713408  }
 0x382   : > { %824 = vrot.lane.b32.xlu2 %v819_v31, %s2206_s17  ;;  %s1602_s17 = sshll.u32 %s618_s16, 4  ;;  %s1603_s17 = int_to_ptr.vmem [resolvable:$true] %s1602_s17 }
 0x384   : > { %v1968_v48 = vpop.eup %1967 }
 0x385   : > { %v1004_v49 = vsel %vm902_vm9, %v1968_v48, 0.0 }
 0x388   : > { %827 = vrot.lane.b32.xlu1 %v819_v31, %s2204_s18 }
 0x38c   : > { %v822_v47 = vpop.permute.xlu0 %821 }
 0x3a8   : > { %1931 = vxpose.binary.xlu2.c.b16.start.end [1/2] (short) (narrow) %v822_v47, %v819_v31, 16  ;;  %v1326_v47 = vunpack.c.l.s4 %v2209_v46 }
 0x3b2   : > { %1005 = vadd.xlane.f32.xlu1 %v1004_v49 }
 0x3da   : > { %v991_v50 = vpop.xlane.xlu1 %990 }
 0x3db   : > { %v995_v51 = vsub.f32 %v977_v33, %v991_v50 }
 0x3dd   : > { %v1002_v52 = vmul.f32 1.442695, %v995_v51  ;;  %v988_v53 = vpop.xlane.xlu2 %987 }
 0x3de   : > { %v994_v54 = vsub.f32 %v958_v37, %v988_v53 }
 0x3df   : > { %1969 = vpow2.f32 %v1002_v52 }
 0x3e0   : > { %v1000_v55 = vmul.f32 1.442695, %v994_v54 }
 0x3e2   : > { %1971 = vpow2.f32 %v1000_v55  ;;  %v985_v56 = vpop.xlane.xlu1 %984 }
 0x3e3   : > { %v993_v57 = vsub.f32 %v939_v39, %v985_v56  ;;  %v2208_v39 = vmov 1983009808  }
 0x3e4   : > { %v1302_v40 = vunpack.c.l.s4 %v2208_v39 }
 0x3e5   : > { %v1970_v58 = vpop.eup %1969  ;;  %v998_v59 = vmul.f32 1.442695, %v993_v57  ;;  %v825_v4 = vpop.permute.xlu2 %824 }
 0x3e6   : > { %v1013_v60 = vsel %vm902_vm9, %v1970_v58, 0.0  ;;  %v1303_v44 = vunpack.c.0.s8 %v1302_v40 }
 0x3e7   : > { %1014 = vadd.xlane.f32.xlu0 %v1013_v60  ;;  %1973 = vpow2.f32 %v998_v59 }
 0x3e8   : > { %v1972_v61 = vpop.eup %1971 }
 0x3e9   : > { %v1010_v62 = vsel %vm902_vm9, %v1972_v61, 0.0 }
 0x3ea   : > { %1011 = vadd.xlane.f32.xlu1 %v1010_v62 }
 0x3ed   : > { %v1974_v63 = vpop.eup %1973 }
 0x3ee   : > { %v1007_v1 = vsel %vm902_vm9, %v1974_v63, 0.0 }
 0x3f2   : > { %1008 = vadd.xlane.f32.xlu1 %v1007_v1 }
 0x3fa   : > { %v828_v2 = vpop.permute.xlu1 %827 }
 0x425   : > { %v1006_v3 = vpop.xlane.xlu1 %1005 }
 0x426   : > { %1975 = vrcp.f32 %v1006_v3 }
 0x42c   : > { %v1976_v5 = vpop.eup %1975  ;;  %1934 = vxpose.binary.xlu1.c.b16.start.end [1/2] (short) (narrow) %v828_v2, %v825_v4, 16 }
 0x42d   : > { %v1020_v6 = vmul.f32 %v1976_v5, %v1968_v48 }
 0x42f   : > { %v1024_v7 = vpack.c.bf16 %v1020_v6, %v1020_v6 }
 0x431   : > { %v1096_v9 = vsel %vm902_vm9, %v1024_v7, 0 }
 0x432   : > { %1105 = vmatpush.bf16.xpose.msrb.mxu2 %v1096_v9 }
 0x449   : > { %v1932_v10 = vpop.trf.xlu2 }
 0x44a   : > { %1762 = vmatmul.msk.bf16.vlgmr.msrb.gmra.mxu2 %vm902_vm9, %v1932_v10 }
 0x451   : > { %v1933_v26 = vpop.trf.xlu2 }
 0x45a   : > { %v1015_v11 = vpop.xlane.xlu0 %1014 }
 0x45b   : > { %1977 = vrcp.f32 %v1015_v11 }
 0x45d   : > { %v1012_v12 = vpop.xlane.xlu1 %1011 }
 0x45e   : > { %1979 = vrcp.f32 %v1012_v12 }
 0x461   : > { %v1978_v13 = vpop.eup %1977 }
 0x462   : > { %v1023_v14 = vmul.f32 %v1978_v13, %v1970_v58  ;;  %v1327_v58 = vunpack.c.0.s8 %v1326_v47 }
 0x464   : > { %v1980_v15 = vpop.eup %1979  ;;  %v1027_v16 = vpack.c.bf16 %v1023_v14, %v1023_v14 }
 0x465   : > { %v1009_v17 = vpop.xlane.xlu1 %1008  ;;  %v1022_v18 = vmul.f32 %v1980_v15, %v1972_v61 }
 0x466   : > { %1981 = vrcp.f32 %v1009_v17  ;;  %v1153_v19 = vsel %vm902_vm9, %v1027_v16, 0 }
 0x467   : > { %1162 = vmatpush.bf16.xpose.msra.mxu1 %v1153_v19  ;;  %v1026_v20 = vpack.c.bf16 %v1022_v18, %v1022_v18 }
 0x469   : > { %v1134_v21 = vsel %vm902_vm9, %v1026_v20, 0 }
 0x46a   : > { %1143 = vmatpush.bf16.xpose.msra.mxu0 %v1134_v21 }
 0x46c   : > { %v1982_v22 = vpop.eup %1981 }
 0x46d   : > { %v1021_v23 = vmul.f32 %v1982_v22, %v1974_v63 }
 0x46f   : > { %v1025_v24 = vpack.c.bf16 %v1021_v23, %v1021_v23 }
 0x471   : > { %v1115_v25 = vsel %vm902_vm9, %v1025_v24, 0 }
 0x472   : > { %1124 = vmatpush.bf16.xpose.msra.mxu3 %v1115_v25 }
 0x479   : > { %1763 = vmatmul.msk.bf16.vlgmr.msra.gmra.mxu3 %vm902_vm9, %v1933_v26 }
 0x4cd   : > { %v1107_v27 = vpop.f32.mrf.mxu2 }
 0x4d5   : > { %v1109_v29 = vpop.f32.mrf.mxu2 }
 0x4d8   : > { %v1935_v28 = vpop.trf.xlu1 }
 0x4d9   : > { %1764 = vmatmul.msk.bf16.vlgmr.msra.gmra.mxu0 %vm902_vm9, %v1935_v28 }
 0x4e0   : > { %v1936_v30 = vpop.trf.xlu1 }
 0x4e1   : > { %1765 = vmatmul.msk.bf16.vlgmr.msra.gmra.mxu1 %vm902_vm9, %v1936_v30 }
 0x4fc   : > { %v1126_v31 = vpop.f32.mrf.mxu3 }
 0x504   : > { %v1128_v32 = vpop.f32.mrf.mxu3 }
 0x556   : > { %v1145_v33 = vpop.f32.mrf.mxu0 }
 0x557   : > { %v1937_v34 = vpack.i.bf16 %v1107_v27, %v1145_v33 }
 0x559   : > { %1938 = vxpose.xlu0.b32.start.end [1/1] (short) (narrow) %v1937_v34, 8 }
 0x55e   : > { %v1147_v35 = vpop.f32.mrf.mxu0  ;;  %v1164_v36 = vpop.f32.mrf.mxu1 }
 0x55f   : > { %v1944_v37 = vpack.i.bf16 %v1126_v31, %v1164_v36 }
 0x561   : > { %1945 = vxpose.xlu2.b32.start.end [1/1] (short) (narrow) %v1944_v37, 8 }
 0x566   : > { %v1166_v38 = vpop.f32.mrf.mxu1 }
 0x5fa   : > { %v1946_v41 = vpop.trf.xlu2 }
 0x5fb   : > { %v1950_v42 = vunpack.i.h.bf16 %v1946_v41  ;;  %v1947_v43 = vunpack.i.l.bf16 %v1946_v41 }
 0x5fd   : > { %v1939_v45 = vpop.trf.xlu0  ;;  %v1311_v48 = vrot.slane %v1950_v42, 4  ;;  %v1309_v49 = vrot.slane %v1947_v43, 4 }
 0x5fe   : > { %v1943_v50 = vunpack.i.h.bf16 %v1939_v45  ;;  %v1940_v51 = vunpack.i.l.bf16 %v1939_v45 }
 0x5ff   : > { %v1310_v52 = vsel %vm1297_vm11, %v1309_v49, %v1950_v42  ;;  %v1312_v53 = vsel %vm1297_vm11, %v1947_v43, %v1311_v48 }
 0x600   : > { %v1299_v54 = vrot.slane %v1943_v50, 4  ;;  %v1296_v55 = vrot.slane %v1940_v51, 4  ;;  %v1316_v56 = vperm.slane %v1310_v52, %v1303_v44  ;;  %v1320_v57 = vperm.slane %v1312_v53, %v1303_v44  ;;  %v1811_v52 = vld [vmem:[#allocation7] sm:$0xff] }
 0x602   : > { %v1298_v59 = vsel %vm1297_vm11, %v1296_v55, %v1943_v50  ;;  %v1300_v60 = vsel %vm1297_vm11, %v1940_v51, %v1299_v54  ;;  %v1321_v61 = vrot.slane %v1316_v56, 4  ;;  %v1333_v62 = vrot.slane %v1320_v57, 4  ;;  %v1812_v51 = vld [vmem:[#allocation7 + $0x8] sm:$0xff] }
 0x603   : > { %v1304_v63 = vperm.slane %v1298_v59, %v1303_v44  ;;  %v1308_v1 = vperm.slane %v1300_v60, %v1303_v44  ;;  %1454 = vmatpush.bf16.msra.mxu2 %v1812_v51  ;;  %v1956_v60 = vld [vmem:[%s2594_s10] ss:$0 sm:$0xff] }
 0x605   : > { %v1323_v2 = vrot.slane %v1304_v63, 4  ;;  %v1335_v3 = vrot.slane %v1308_v1, 4  ;;  %v1322_v4 = vsel %vm1297_vm11, %v1321_v61, %v1304_v63  ;;  %v1334_v5 = vsel %vm1297_vm11, %v1333_v62, %v1308_v1 }
 0x606   : > { %v1328_v6 = vperm.slane %v1322_v4, %v1327_v58  ;;  %v1340_v7 = vperm.slane %v1334_v5, %v1327_v58 }
 0x607   : > { %v1324_v9 = vsel %vm1297_vm11, %v1316_v56, %v1323_v2  ;;  %v1336_v10 = vsel %vm1297_vm11, %v1320_v57, %v1335_v3  ;;  %1455 = vmatpush.bf16.msra.mxu2 %v1811_v52 }
 0x608   : > { %v1332_v11 = vperm.slane %v1324_v9, %v1327_v58  ;;  %v1344_v12 = vperm.slane %v1336_v10, %v1327_v58  ;;  %v1345_v15 = vrot.slane %v1328_v6, 4  ;;  %v1349_v16 = vrot.slane %v1340_v7, 4  ;;  %v1814_v9 = vld [vmem:[#allocation8 + $0x8] sm:$0xff]  ;;  %v1813_v10 = vld [vmem:[#allocation8] sm:$0xff] }
 0x609   : > { %1524 = vmatpush.bf16.msrb.mxu3 %v1814_v9 }
 0x60a   : > { %v1347_v13 = vrot.slane %v1332_v11, 4  ;;  %v1351_v14 = vrot.slane %v1344_v12, 4  ;;  %v1346_v25 = vsel %vm1297_vm11, 0.0, %v1345_v15  ;;  %v1350_v26 = vsel %vm1297_vm11, 0.0, %v1349_v16 }
 0x60c   : > { %v1352_v17 = vsel %vm1297_vm11, 0.0, %v1351_v14  ;;  %v1348_v18 = vsel %vm1297_vm11, 0.0, %v1347_v13  ;;  %v1353_v19 = vsel %vm1297_vm11, %v1347_v13, %v1328_v6  ;;  %v1364_v20 = vsel %vm1297_vm11, %v1351_v14, %v1340_v7  ;;  %v1817_v13 = vld [vmem:[%s2599_s15 + $0x10] sm:$0xff] }
 0x60d   : > { %v1357_v21 = vperm.slane %v1353_v19, %v1303_v44  ;;  %v1358_v22 = vrot.slane %v1348_v18, 4  ;;  %v1368_v23 = vperm.slane %v1364_v20, %v1303_v44  ;;  %v1369_v24 = vrot.slane %v1352_v17, 4  ;;  %1525 = vmatpush.bf16.msrb.mxu3 %v1813_v10 }
 0x60f   : > { %v1359_v27 = vsel %vm1297_vm11, %v1358_v22, %v1346_v25  ;;  %v1370_v28 = vsel %vm1297_vm11, %v1369_v24, %v1350_v26  ;;  %v1377_v29 = vrot.slane %v1357_v21, 4  ;;  %v1389_v30 = vrot.slane %v1368_v23, 4 }
 0x610   : > { %v1363_v31 = vperm.slane %v1359_v27, %v1303_v44  ;;  %v1374_v32 = vperm.slane %v1370_v28, %v1303_v44  ;;  %v1816_v27 = vld [vmem:[%s2599_s15 + $0x8] sm:$0xff]  ;;  %v1815_v28 = vld [vmem:[%s2599_s15] sm:$0xff] }
 0x612   : > { %v1378_v33 = vsel %vm1297_vm11, %v1363_v31, %v1377_v29  ;;  %v1390_v34 = vsel %vm1297_vm11, %v1374_v32, %v1389_v30  ;;  %v1375_v35 = vrot.slane %v1363_v31, 4  ;;  %v1387_v36 = vrot.slane %v1374_v32, 4 }
 0x613   : > { %v1386_v37 = vperm.slane %v1378_v33, %v1327_v58  ;;  %v1398_v38 = vperm.slane %v1390_v34, %v1327_v58 }
 0x614   : > { %v1376_v39 = vsel %vm1297_vm11, %v1375_v35, %v1357_v21  ;;  %v1388_v40 = vsel %vm1297_vm11, %v1387_v36, %v1368_v23  ;;  %v1958_v23 = vld [vmem:[%s2637_s12] ss:$0 sm:$0xff]  ;;  %s1600_s12 = scalar_lea.hbm %s2641_s7, %s1802_s23 }
 0x615   : > { %v1403_v41 = vrot.slane %v1398_v38, 4  ;;  %v1405_v42 = vrot.slane %v1386_v37, 4  ;;  %v1382_v43 = vperm.slane %v1376_v39, %v1327_v58  ;;  %v1394_v45 = vperm.slane %v1388_v40, %v1327_v58  ;;  %v1960_v35 = vld [vmem:[%s2640_s28] ss:$0 sm:$0xff]  ;;  %s1604_s25 = sshll.u32 %s1600_s12, 4  ;;  %s1605_s25 = int_to_ptr.hbm [resolvable:$true] %s1604_s25 }
 0x616   : > { %s2119_s14 = sshra.s32 %s1605_s25, 4  ;;  %s2120_s14 = int_to_ptr.hbm [resolvable:$true] %s2119_s14 }
 0x617   : > { %v1404_v46 = vsel %vm1297_vm11, %v1403_v41, %v1386_v37  ;;  %v1406_v44 = vsel %vm1297_vm11, %v1398_v38, %v1405_v42  ;;  %v1399_v47 = vrot.slane %v1394_v45, 4  ;;  %v1401_v48 = vrot.slane %v1382_v43, 4  ;;  %s2121_s26 = scalar_lea.hbm %s2120_s14, 8  ;;  %p2126_p5 = scmp.lt.s32.totalorder %s2120_s14, %s2641_s7 }
 0x618   : > { %1412 = vrot.lane.b32.xlu1 %v1404_v46, %s2210_s24  ;;  %1416 = vrot.lane.b32.xlu0 %v1406_v44, %s2211_s29  ;;  %p2122_p1 = scmp.ne.s32.totalorder %s2120_s14, %s2121_s26 }
 0x619   : > { %v1402_v49 = vsel %vm1297_vm11, %v1394_v45, %v1401_v48  ;;  %v1400_v50 = vsel %vm1297_vm11, %v1399_v47, %v1382_v43 }
 0x61a   : > { %1408 = vrot.lane.b32.xlu2 %v1402_v49, %s2212_s1  ;;  %s2639_s1 = sld [smem:[#allocation28_spill]]  ;;  %p2123_p2 = pnand %p2122_p1, %p2343_p4 }
 0x61c   : > { %p2124_p3 = pneg %p2123_p2 }
 0x620   : > { %v1959_v29 = vld [vmem:[%s2639_s1] ss:$0 sm:$0xff]  ;;  %s2125_s1 = scalar_lea.hbm %s2641_s7, 16 }
 0x621   : > { %p2127_p6 = scmp.lt.s32.totalorder %s2125_s1, %s2121_s26 }
 0x623   : > { %p2128_p7 = por %p2127_p6, %p2126_p5 }
 0x625   : > { %p2129_p9 = pnand %p2128_p7, %p2124_p3 }
 0x674   : > { %v1409_v53 = vpop.permute.xlu2 %1408 }
 0x675   : > { %v1419_v54 = vsel %vm902_vm9, %v1400_v50, %v1409_v53 }
 0x68a   : > { %v1413_v55 = vpop.permute.xlu1 %1412  ;;  %v1417_v56 = vpop.permute.xlu0 %1416 }
 0x68b   : > { %v1421_v57 = vsel %vm1420_vm12, %v1419_v54, %v1413_v55 }
 0x68c   : > { %v1423_v58 = vsel %vm1422_vm13, %v1421_v57, %v1417_v56 }
 0x68d   : > { %v1424_v59 = vpack.c.bf16 %v1423_v58, %v1423_v58 }
 0x68f   : > { %1774 = vmatmul.msk.bf16.vlgmr.msra.gmra.mxu2 %vm628_vm0, %v1424_v59 }
 0x712   : > { %v1457_v61 = vpop.f32.mrf.mxu2 }
 0x713   : > { %v1458_v62 = vadd.f32 %v1956_v60, %v1457_v61 }
 0x715   : > { %v1461_v63 = vadd.f32 %v1458_v62, %v2413_v0  ;;  %v1818_v0 = vld [vmem:[%s2599_s15 + $0x18] sm:$0xff] }
 0x716   : > { %1577 = vmatpush.bf16.msrb.mxu0 %v1818_v0 }
 0x717   : > { %v1462_v1 = vsel %vm628_vm0, %v1461_v63, 0.0 }
 0x718   : > { %1463 = vadd.xlane.f32.xlu1 %v1462_v1 }
 0x71a   : > { %v1459_v2 = vpop.f32.mrf.mxu2  ;;  %1578 = vmatpush.bf16.msrb.mxu0 %v1817_v13 }
 0x71e   : > { %1579 = vmatpush.bf16.msrb.mxu0 %v1816_v27 }
 0x722   : > { %1580 = vmatpush.bf16.msrb.mxu0 %v1815_v28 }
 0x78b   : > { %v1464_v3 = vpop.xlane.xlu1 %1463 }
 0x78c   : > { %v1465_v4 = vmul.f32 %v1464_v3, %v2417_v8 }
 0x78e   : > { %v1466_v5 = vsub.f32 %v1461_v63, %v1465_v4 }
 0x790   : > { %v1467_v6 = vmul.f32 %v1466_v5, %v1466_v5 }
 0x792   : > { %v1468_v7 = vsel %vm628_vm0, %v1467_v6, 0.0 }
 0x793   : > { %1469 = vadd.xlane.f32.xlu2 %v1468_v7 }
 0x806   : > { %v1470_v11 = vpop.xlane.xlu2 %1469 }
 0x807   : > { %v1471_v12 = vmul.f32 %v1470_v11, %v2417_v8  ;;  %v1957_v8 = vld [vmem:[%s2595_s11] ss:$0 sm:$0xff] }
 0x809   : > { %v1472_v14 = vadd.f32 1e-05, %v1471_v12 }
 0x80b   : > { %1983 = vrsqrt.f32 %v1472_v14  ;;  %vm1479_vm15 = vweird.f32 %v1472_v14 }
 0x811   : > { %v1984_v15 = vpop.eup %1983 }
 0x812   : > { %v1474_v16 = vmul.f32 %v1984_v15, %v1472_v14  ;;  %vm1480_vm14 = vweird.f32 %v1984_v15 }
 0x813   : > { %vm1481_vm1 = vmor %vm1479_vm15, %vm1480_vm14 }
 0x814   : > { %v1475_v17 = vmul.f32 %v1984_v15, %v1474_v16 }
 0x816   : > { %v1476_v18 = vmul.f32 0.5, %v1475_v17 }
 0x818   : > { %v1477_v19 = vsub.f32 1.5, %v1476_v18 }
 0x81a   : > { %v1478_v20 = vmul.f32 %v1984_v15, %v1477_v19 }
 0x81c   : > { %v1482_v21 = vsel %vm1481_vm1, %v1984_v15, %v1478_v20 }
 0x81d   : > { %v1483_v22 = vmul.f32 %v1482_v21, %v1466_v5 }
 0x81f   : > { %v1488_v24 = vmul.f32 %v1957_v8, %v1483_v22 }
 0x821   : > { %v1493_v25 = vadd.f32 %v1958_v23, %v1488_v24 }
 0x823   : > { %v1494_v26 = vpack.c.bf16 %v1493_v25, %v1493_v25 }
 0x825   : > { %1783 = vmatmul.msk.bf16.vlgmr.msrb.gmra.mxu3 %vm628_vm0, %v1494_v26 }
 0x8a8   : > { %v1527_v30 = vpop.f32.mrf.mxu3 }
 0x8a9   : > { %v1528_v31 = vadd.f32 %v1959_v29, %v1527_v30 }
 0x8ab   : > { %v1531_v32 = vmax.f32 %v1528_v31, 0.0 }
 0x8ad   : > { %v1532_v33 = vpack.c.bf16 %v1531_v32, %v1531_v32 }
 0x8af   : > { %1800 = vmatmul.msk.bf16.vlgmr.msrb.gmra.mxu0 %vm1569_vm2, %v1532_v33 }
 0x8b0   : > { %v1529_v34 = vpop.f32.mrf.mxu3 }
 0x92c   : > { %v1582_v36 = vpop.f32.mrf.mxu0 }
 0x92d   : > { %v1583_v37 = vadd.f32 %v1960_v35, %v1582_v36 }
 0x92f   : > { %v1586_v38 = vadd.f32 %v1583_v37, %v1461_v63 }
 0x931   : > { %1587 = vst.msk [vmem:[%s618_s16] sm:$0xff] %vm628_vm0, %v1586_v38 }
 0x932   : > { %2132 = shalt.err (!%p2129_p9)
}
 0x933   : > { %1835 = dma.vmem_to_hbm [thread:$0]  (%p2343_p4), %s1603_s17, 128, %s1605_s25, %s1589_s27  }
 0x934   : > { %v1584_v39 = vpop.f32.mrf.mxu0 }
 0x935 PF: > { %s2643_s21 = sld [smem:[#allocation19_spill]] }
 0x936   : > { %s2644_s0 = sld [smem:[#allocation15_spill]] }
 0x93b   : > { %p1862_p10 = scmp.ge.s32.totalorder %s2643_s21, 2 }
 0x93c   : > { %s1616_s28 = sand.u32 1, %s2644_s0  }
 0x93d   : > { %p1851_p11 = pnand %p1862_p10, %p2350_p8  ;;  %s1617_s20 = scalar_lea.sflag [#allocation4], %s1616_s28 }
 0x93f   : > { %p1852_p12 = pneg %p1851_p11 }
 0x941   : > { %2170 = dma.done.wait (%p1852_p12), %s1617_s20, 128  }
 0x942   : > { %2172 = vsyncadd (%p1852_p12), %s1617_s20, 4294967168  ;;  %s33_s29 = sadd.s32 1, %s2643_s21   ;;  %s2646_s24 = sld [smem:[#allocation16_spill]] }
 0x943   : > { %p30_p13 = scmp.ge.s32.totalorder %s33_s29, 4   ;;  %s2647_s25 = sld [smem:[#allocation17_spill]] }
 0x944   : > { %s2648_s26 = sld [smem:[#allocation23_spill]] }
 0x945   : > { %s2649_s27 = sld [smem:[#allocation18_spill]]  ;;  %32 = sbr.rel (!%p30_p13) target bundleno = 15 (0xf), region = 141 }
 0x946   : > { %s2650_s28 = sld [smem:[#allocation20_spill]] }
 0x94a   :  { %1623 = vsyncpa [#allocation3], 1 }
 0x94b   :  { %1625 = vsyncpa [#allocation3 + $0x1], 1 }
 0x94c   :  { %1626 = vsyncpa [#allocation6], 1 }
 0x94d   :  { %1627 = vsyncpa [#allocation9], 1 }
 0x94e   :  { %1628 = vsyncpa [#allocation4], 1 }
 0x94f   :  { %1630 = vsyncpa [#allocation4 + $0x1], 1 }

</bundles_post_ra>
